<compile_context>
chip_gen: v7x
topology: tpu7x:2x2x1
jax: 0.10.0
libtpu: 0.0.40
codegen_flags: <defaults>
</compile_context>

<pallas_src>
import functools

import jax
import jax.numpy as jnp
from jax.experimental import pallas as pl
from jax.experimental.pallas import tpu as pltpu


_LANES = 128
_MAX_TILE_ROWS = 2048  # (2048, 128) f32 = 1 MiB per input per pipeline buffer


def _loss_kernel(x_ref, t_ref, out_ref, bce_acc, inter_acc, denom_acc,
                 *, n_last, mask_last):
    """Streaming partial reductions for BCE-with-logits + Dice.

    out_ref (SMEM, shape (3,), f32), written once on the last grid step:
      out[0] = sum( bce_elementwise )          (numerically stable logits form)
      out[1] = sum( sigmoid(x) * t )           (dice intersection)
      out[2] = sum( sigmoid(x) + t )           (dice denominator)
    """
    i = pl.program_id(0)
    num_tiles = pl.num_programs(0)
    tile_rows, lanes = x_ref.shape

    @pl.when(i == 0)
    def _():
        bce_acc[...] = jnp.zeros_like(bce_acc)
        inter_acc[...] = jnp.zeros_like(inter_acc)
        denom_acc[...] = jnp.zeros_like(denom_acc)

    def accumulate(valid):
        x = x_ref[...].astype(jnp.float32)
        t = t_ref[...].astype(jnp.float32)

        # Shared transcendental: one exp feeds both BCE and sigmoid.
        e = jnp.exp(-jnp.abs(x))
        # BCEWithLogits elementwise: max(x, 0) - x*t + log(1 + exp(-|x|))
        bce = jnp.maximum(x, 0.0) - x * t + jnp.log1p(e)
        # Numerically stable sigmoid from the same exp; approx reciprocal runs
        # on the EUP slot (which has slack), off the binding VALU path.
        inv = pl.reciprocal(1.0 + e, approx=True)
        sig = jnp.where(x >= 0.0, inv, e * inv)

        if valid is not None:
            # Edge block is NOT zero-padded (it may hold garbage / previous
            # VMEM contents): must select, not multiply, so Inf/NaN from the
            # garbage region can never poison the partial sums.
            bce = jnp.where(valid, bce, 0.0)
            sig = jnp.where(valid, sig, 0.0)
            t = jnp.where(valid, t, 0.0)

        def fold(v):
            # (tile_rows, 128) -> (8, 128): rows spaced 8 apart live in
            # different vregs, so this is a pure elementwise vreg tree-add
            # (no lane/sublane crossing) and the accumulators stay one vreg.
            return jnp.sum(v.reshape(tile_rows // 8, 8, lanes), axis=0)

        bce_acc[...] += fold(bce)
        inter_acc[...] += fold(sig * t)
        denom_acc[...] += fold(sig + t)

    if mask_last:
        # Fast unmasked path for every tile but the last one.
        @pl.when(i < num_tiles - 1)
        def _():
            accumulate(None)

        @pl.when(i == num_tiles - 1)
        def _():
            # Tile-local flat index (max tile_rows*128, far below int32 range).
            row = jax.lax.broadcasted_iota(jnp.int32, (tile_rows, lanes), 0)
            lane = jax.lax.broadcasted_iota(jnp.int32, (tile_rows, lanes), 1)
            accumulate(row * lanes + lane < n_last)
    else:
        accumulate(None)

    @pl.when(i == num_tiles - 1)
    def _():
        out_ref[0] = jnp.sum(bce_acc[...])
        out_ref[1] = jnp.sum(inter_acc[...])
        out_ref[2] = jnp.sum(denom_acc[...])


@functools.partial(jax.jit, static_argnames=("smooth", "max_tile_rows"))
def combined_bce_dice_loss(logits, target, smooth=0.1, max_tile_rows=None):
    """Flatten to a (rows, 128) view, run the Pallas streaming-reduction kernel,
    then combine the three partial sums into the scalar loss."""
    n = logits.size  # static under jit

    # Stream native dtypes (no wrapper astype); the kernel casts to f32.
    x_flat = logits.reshape(-1)
    t_flat = target.reshape(-1)

    # Pad (full copy) ONLY when the element count is not lane-aligned; any
    # remainder w.r.t. the tile size is handled by the masked edge block, so
    # the common case streams the inputs with zero extra HBM copies.
    rows = -(-n // _LANES)                    # cdiv
    lane_pad = rows * _LANES - n
    if lane_pad:
        x_flat = jnp.pad(x_flat, (0, lane_pad))
        t_flat = jnp.pad(t_flat, (0, lane_pad))
    x2 = x_flat.reshape(rows, _LANES)
    t2 = t_flat.reshape(rows, _LANES)

    # Adaptive tile: big enough to amortize per-step pipeline overhead, never
    # larger than the (8-row-rounded) data itself, always a multiple of 8 rows.
    max_rows = _MAX_TILE_ROWS if max_tile_rows is None else max(8, (max_tile_rows // 8) * 8)
    rows8 = ((rows + 7) // 8) * 8
    tile_rows = min(max_rows, rows8)
    num_tiles = -(-rows // tile_rows)
    tile_elems = tile_rows * _LANES
    n_last = n - (num_tiles - 1) * tile_elems   # valid elements in last tile
    mask_last = n_last != tile_elems            # static: skip masking entirely if exact fit

    kernel = functools.partial(_loss_kernel, n_last=n_last, mask_last=mask_last)
    tile_spec = pl.BlockSpec((tile_rows, _LANES), lambda i: (i, 0))

    sums = pl.pallas_call(
        kernel,
        out_shape=jax.ShapeDtypeStruct((3,), jnp.float32),
        grid_spec=pltpu.PrefetchScalarGridSpec(
            num_scalar_prefetch=0,
            grid=(num_tiles,),
            in_specs=[tile_spec, tile_spec],
            out_specs=pl.BlockSpec(memory_space=pltpu.SMEM),
            scratch_shapes=[pltpu.VMEM((8, _LANES), jnp.float32)] * 3,
        ),
        compiler_params=pltpu.CompilerParams(
            dimension_semantics=("arbitrary",)),
    )(x2, t2)

    bce = sums[0] / jnp.float32(n)
    dice = 1.0 - (2.0 * sums[1] + smooth) / (sums[2] + smooth)
    return bce + dice


def _reference(logits, target, smooth=0.1):
    """Pure-JAX reference matching the PyTorch module semantics."""
    x = logits.astype(jnp.float32).reshape(-1)
    t = target.astype(jnp.float32).reshape(-1)
    bce = jnp.mean(jnp.maximum(x, 0.0) - x * t + jnp.log1p(jnp.exp(-jnp.abs(x))))
    s = jax.nn.sigmoid(x)
    inter = jnp.sum(s * t)
    dice = 1.0 - (2.0 * inter + smooth) / (jnp.sum(s) + jnp.sum(t) + smooth)
    return bce + dice


if __name__ == "__main__":
    key = jax.random.PRNGKey(0)
    k1, k2 = jax.random.split(key)

    # NCHW-shaped logits and binary targets, as the module expects.
    B, C, H, W = 2, 4, 16, 16
    logits = jax.random.normal(k1, (B, C, H, W), dtype=jnp.float32)
    target = (jax.random.uniform(k2, (B, C, H, W)) > 0.5).astype(jnp.float32)

    # Main case: lane-aligned, single tile, no padding, no masking.
    loss = jax.block_until_ready(combined_bce_dice_loss(logits, target))
    ref = _reference(logits, target)
    # Tolerance is set by the EUP approximate reciprocal in the sigmoid path.
    assert jnp.allclose(loss, ref, rtol=1e-3, atol=1e-3), (loss, ref)

    # Multi-tile path: exercises accumulator init / accumulate / finalize.
    loss_mt = jax.block_until_ready(
        combined_bce_dice_loss(logits, target, max_tile_rows=8))
    assert jnp.allclose(loss_mt, ref, rtol=1e-3, atol=1e-3), (loss_mt, ref)

    # Non-lane-aligned shape: exercises the lane pad + masked edge tile.
    k3, k4 = jax.random.split(k2)
    logits_odd = jax.random.normal(k3, (2, 3, 7, 9), dtype=jnp.float32)
    target_odd = (jax.random.uniform(k4, (2, 3, 7, 9)) > 0.5).astype(jnp.float32)
    loss_odd = jax.block_until_ready(combined_bce_dice_loss(logits_odd, target_odd))
    ref_odd = _reference(logits_odd, target_odd)
    assert jnp.allclose(loss_odd, ref_odd, rtol=1e-3, atol=1e-3), (loss_odd, ref_odd)

    print("KERNEL_OK")
</pallas_src>

<mosaic_0001>
module attributes {stable_mosaic.version = 11 : i64} {
  func.func @_loss_kernel(%arg0: i32, %arg1: memref<16x128xf32, #tpu.memory_space<vmem>>, %arg2: memref<16x128xf32, #tpu.memory_space<vmem>>, %arg3: memref<3xf32, #tpu.memory_space<smem>>, %arg4: memref<8x128xf32, #tpu.memory_space<vmem>>, %arg5: memref<8x128xf32, #tpu.memory_space<vmem>>, %arg6: memref<8x128xf32, #tpu.memory_space<vmem>>) attributes {dimension_semantics = [#tpu.dimension_semantics<arbitrary>], iteration_bounds = array<i64: 1>, scalar_prefetch = 0 : i64, scratch_operands = 3 : i64, tpu.core_type = #tpu.core_type<tc>, window_params = [{transform_indices = @transform_0, window_bounds = array<i64: 16, 128>}, {transform_indices = @transform_1, window_bounds = array<i64: 16, 128>}, {transform_indices = @transform_2, window_bounds = array<i64: 3>}]} {
    %c0_i32 = arith.constant 0 : i32
    %0 = arith.cmpi eq, %arg0, %c0_i32 : i32
    %1 = arith.extui %0 : i1 to i32
    %c0_i32_0 = arith.constant 0 : i32
    %2 = arith.cmpi ne, %1, %c0_i32_0 : i32
    scf.if %2 {
      %cst_24 = arith.constant 0.000000e+00 : f32
      %42 = vector.broadcast %cst_24 : f32 to vector<8x128xf32>
      %c0_25 = arith.constant 0 : index
      %c0_26 = arith.constant 0 : index
      %43 = vector.load %arg4[%c0_25, %c0_26] : memref<8x128xf32, #tpu.memory_space<vmem>>, vector<8x128xf32>
      tpu.vector_store %arg4[%c0_25, %c0_26], %42 {strides = array<i32>} : memref<8x128xf32, #tpu.memory_space<vmem>>, vector<8x128xf32>,
      %cst_27 = arith.constant 0.000000e+00 : f32
      %44 = vector.broadcast %cst_27 : f32 to vector<8x128xf32>
      %c0_28 = arith.constant 0 : index
      %c0_29 = arith.constant 0 : index
      %45 = vector.load %arg5[%c0_28, %c0_29] : memref<8x128xf32, #tpu.memory_space<vmem>>, vector<8x128xf32>
      tpu.vector_store %arg5[%c0_28, %c0_29], %44 {strides = array<i32>} : memref<8x128xf32, #tpu.memory_space<vmem>>, vector<8x128xf32>,
      %cst_30 = arith.constant 0.000000e+00 : f32
      %46 = vector.broadcast %cst_30 : f32 to vector<8x128xf32>
      %c0_31 = arith.constant 0 : index
      %c0_32 = arith.constant 0 : index
      %47 = vector.load %arg6[%c0_31, %c0_32] : memref<8x128xf32, #tpu.memory_space<vmem>>, vector<8x128xf32>
      tpu.vector_store %arg6[%c0_31, %c0_32], %46 {strides = array<i32>} : memref<8x128xf32, #tpu.memory_space<vmem>>, vector<8x128xf32>,
    } else {
    }
    %c0 = arith.constant 0 : index
    %c0_1 = arith.constant 0 : index
    %3 = vector.load %arg1[%c0, %c0_1] : memref<16x128xf32, #tpu.memory_space<vmem>>, vector<16x128xf32>
    %c0_2 = arith.constant 0 : index
    %c0_3 = arith.constant 0 : index
    %4 = vector.load %arg2[%c0_2, %c0_3] : memref<16x128xf32, #tpu.memory_space<vmem>>, vector<16x128xf32>
    %5 = math.absf %3 : vector<16x128xf32>
    %cst = arith.constant 0.000000e+00 : f32
    %6 = vector.broadcast %cst : f32 to vector<16x128xf32>
    %7 = arith.subf %6, %5 : vector<16x128xf32>
    %8 = math.exp %7 : vector<16x128xf32>
    %cst_4 = arith.constant 0.000000e+00 : f32
    %9 = vector.broadcast %cst_4 : f32 to vector<16x128xf32>
    %10 = arith.maximumf %3, %9 : vector<16x128xf32>
    %11 = arith.mulf %3, %4 : vector<16x128xf32>
    %12 = arith.subf %10, %11 : vector<16x128xf32>
    %13 = math.log1p %8 : vector<16x128xf32>
    %14 = arith.addf %12, %13 : vector<16x128xf32>
    %cst_5 = arith.constant 1.000000e+00 : f32
    %15 = vector.broadcast %cst_5 : f32 to vector<16x128xf32>
    %16 = arith.addf %15, %8 : vector<16x128xf32>
    %17 = tpu.reciprocal %16 {approx = true} : vector<16x128xf32> -> vector<16x128xf32>
    %cst_6 = arith.constant 0.000000e+00 : f32
    %18 = vector.broadcast %cst_6 : f32 to vector<16x128xf32>
    %19 = arith.cmpf oge, %3, %18 : vector<16x128xf32>
    %20 = arith.mulf %8, %17 : vector<16x128xf32>
    %21 = arith.select %19, %17, %20 : vector<16x128xi1>, vector<16x128xf32>
    %c0_7 = arith.constant 0 : index
    %c0_8 = arith.constant 0 : index
    %22 = vector.load %arg4[%c0_7, %c0_8] : memref<8x128xf32, #tpu.memory_space<vmem>>, vector<8x128xf32>
    %23 = vector.shape_cast %14 : vector<16x128xf32> to vector<2x8x128xf32>
    %cst_9 = arith.constant dense<0.000000e+00> : vector<8x128xf32>
    %24 = vector.multi_reduction <add>, %23, %cst_9 [0] : vector<2x8x128xf32> to vector<8x128xf32>
    %25 = arith.addf %22, %24 : vector<8x128xf32>
    %c0_10 = arith.constant 0 : index
    %c0_11 = arith.constant 0 : index
    %26 = vector.load %arg4[%c0_10, %c0_11] : memref<8x128xf32, #tpu.memory_space<vmem>>, vector<8x128xf32>
    tpu.vector_store %arg4[%c0_10, %c0_11], %25 {strides = array<i32>} : memref<8x128xf32, #tpu.memory_space<vmem>>, vector<8x128xf32>,
    %c0_12 = arith.constant 0 : index
    %c0_13 = arith.constant 0 : index
    %27 = vector.load %arg5[%c0_12, %c0_13] : memref<8x128xf32, #tpu.memory_space<vmem>>, vector<8x128xf32>
    %28 = arith.mulf %21, %4 : vector<16x128xf32>
    %29 = vector.shape_cast %28 : vector<16x128xf32> to vector<2x8x128xf32>
    %cst_14 = arith.constant dense<0.000000e+00> : vector<8x128xf32>
    %30 = vector.multi_reduction <add>, %29, %cst_14 [0] : vector<2x8x128xf32> to vector<8x128xf32>
    %31 = arith.addf %27, %30 : vector<8x128xf32>
    %c0_15 = arith.constant 0 : index
    %c0_16 = arith.constant 0 : index
    %32 = vector.load %arg5[%c0_15, %c0_16] : memref<8x128xf32, #tpu.memory_space<vmem>>, vector<8x128xf32>
    tpu.vector_store %arg5[%c0_15, %c0_16], %31 {strides = array<i32>} : memref<8x128xf32, #tpu.memory_space<vmem>>, vector<8x128xf32>,
    %c0_17 = arith.constant 0 : index
    %c0_18 = arith.constant 0 : index
    %33 = vector.load %arg6[%c0_17, %c0_18] : memref<8x128xf32, #tpu.memory_space<vmem>>, vector<8x128xf32>
    %34 = arith.addf %21, %4 : vector<16x128xf32>
    %35 = vector.shape_cast %34 : vector<16x128xf32> to vector<2x8x128xf32>
    %cst_19 = arith.constant dense<0.000000e+00> : vector<8x128xf32>
    %36 = vector.multi_reduction <add>, %35, %cst_19 [0] : vector<2x8x128xf32> to vector<8x128xf32>
    %37 = arith.addf %33, %36 : vector<8x128xf32>
    %c0_20 = arith.constant 0 : index
    %c0_21 = arith.constant 0 : index
    %38 = vector.load %arg6[%c0_20, %c0_21] : memref<8x128xf32, #tpu.memory_space<vmem>>, vector<8x128xf32>
    tpu.vector_store %arg6[%c0_20, %c0_21], %37 {strides = array<i32>} : memref<8x128xf32, #tpu.memory_space<vmem>>, vector<8x128xf32>,
    %c0_i32_22 = arith.constant 0 : i32
    %39 = arith.cmpi eq, %arg0, %c0_i32_22 : i32
    %40 = arith.extui %39 : i1 to i32
    %c0_i32_23 = arith.constant 0 : i32
    %41 = arith.cmpi ne, %40, %c0_i32_23 : i32
    scf.if %41 {
      %c0_24 = arith.constant 0 : index
      %c0_25 = arith.constant 0 : index
      %42 = vector.load %arg4[%c0_24, %c0_25] : memref<8x128xf32, #tpu.memory_space<vmem>>, vector<8x128xf32>
      %43 = vector.shape_cast %42 : vector<8x128xf32> to vector<1x8x128xf32>
      %cst_26 = arith.constant dense<0.000000e+00> : vector<1xf32>
      %44 = vector.multi_reduction <add>, %43, %cst_26 [1, 2] : vector<1x8x128xf32> to vector<1xf32>
      %45 = vector.shape_cast %44 : vector<1xf32> to vector<1x1x1xf32>
      %46 = vector.extract %45[0, 0, 0] : f32 from vector<1x1x1xf32>
      %c0_27 = arith.constant 0 : index
      %47 = memref.load %arg3[%c0_27] : memref<3xf32, #tpu.memory_space<smem>>
      memref.store %46, %arg3[%c0_27] : memref<3xf32, #tpu.memory_space<smem>>
      %c0_28 = arith.constant 0 : index
      %c0_29 = arith.constant 0 : index
      %48 = vector.load %arg5[%c0_28, %c0_29] : memref<8x128xf32, #tpu.memory_space<vmem>>, vector<8x128xf32>
      %49 = vector.shape_cast %48 : vector<8x128xf32> to vector<1x8x128xf32>
      %cst_30 = arith.constant dense<0.000000e+00> : vector<1xf32>
      %50 = vector.multi_reduction <add>, %49, %cst_30 [1, 2] : vector<1x8x128xf32> to vector<1xf32>
      %51 = vector.shape_cast %50 : vector<1xf32> to vector<1x1x1xf32>
      %52 = vector.extract %51[0, 0, 0] : f32 from vector<1x1x1xf32>
      %c1 = arith.constant 1 : index
      %53 = memref.load %arg3[%c1] : memref<3xf32, #tpu.memory_space<smem>>
      memref.store %52, %arg3[%c1] : memref<3xf32, #tpu.memory_space<smem>>
      %c0_31 = arith.constant 0 : index
      %c0_32 = arith.constant 0 : index
      %54 = vector.load %arg6[%c0_31, %c0_32] : memref<8x128xf32, #tpu.memory_space<vmem>>, vector<8x128xf32>
      %55 = vector.shape_cast %54 : vector<8x128xf32> to vector<1x8x128xf32>
      %cst_33 = arith.constant dense<0.000000e+00> : vector<1xf32>
      %56 = vector.multi_reduction <add>, %55, %cst_33 [1, 2] : vector<1x8x128xf32> to vector<1xf32>
      %57 = vector.shape_cast %56 : vector<1xf32> to vector<1x1x1xf32>
      %58 = vector.extract %57[0, 0, 0] : f32 from vector<1x1x1xf32>
      %c2 = arith.constant 2 : index
      %59 = memref.load %arg3[%c2] : memref<3xf32, #tpu.memory_space<smem>>
      memref.store %58, %arg3[%c2] : memref<3xf32, #tpu.memory_space<smem>>
    } else {
    }
    return
  }
  func.func @transform_0(%arg0: i32) -> (i32, i32) {
    %c0_i32 = arith.constant 0 : i32
    %c0_i32_0 = arith.constant 0 : i32
    return %arg0, %c0_i32 : i32, i32
  }
  func.func @transform_1(%arg0: i32) -> (i32, i32) {
    %c0_i32 = arith.constant 0 : i32
    %c0_i32_0 = arith.constant 0 : i32
    return %arg0, %c0_i32 : i32, i32
  }
  func.func @transform_2(%arg0: i32) -> i32 {
    %c0_i32 = arith.constant 0 : i32
    %c0_i32_0 = arith.constant 0 : i32
    return %c0_i32 : i32
  }
}

</mosaic_0001>

<bundles_post_ra>
// kernel: combined_bce_dice_loss.1
= control target key start
LH: loop header
LB: loop body
LE: loop exit
PB: predicated region body
PF: predicated region fallthrough
CT: control target
= control target key end

     0   :  { %s201_s0 = inlined_call_operand.vmem [shape: f32[16,128], index: 0, kind: input, shape index: {}]   ;;  %s202_s1 = inlined_call_operand.vmem [shape: f32[16,128], index: 1, kind: input, shape index: {}]   ;;  %s203_s2 = inlined_call_operand.vmem [shape: f32[3], index: 2, kind: output, shape index: {}]  }
   0x1   :  { %v19_v0 = vld [vmem:[%s201_s0] sm:$0xff]  ;;  %v20_v1 = vld [vmem:[%s201_s0 + $0x8] sm:$0xff] }
   0x2   :  { %v23_v2 = vand.u32 2147483647, %v19_v0  ;;  %v24_v3 = vand.u32 2147483647, %v20_v1 }
   0x3   :  { %7 = vsyncpa [#allocation6], 0  ;;  %v21_v14 = vld [vmem:[%s202_s1] sm:$0xff]  ;;  %v22_v15 = vld [vmem:[%s202_s1 + $0x8] sm:$0xff]  ;;  %v31_v17 = vmax.f32 %v19_v0, 0.0  ;;  %v32_v21 = vmax.f32 %v20_v1, 0.0 }
   0x4   :  { %v25_v4 = vsub.f32 0.0, %v23_v2  ;;  %v26_v5 = vsub.f32 0.0, %v24_v3  ;;  %v33_v18 = vmul.f32 %v21_v14, %v19_v0  ;;  %v34_v22 = vmul.f32 %v22_v15, %v20_v1  ;;  %s128_s18 = sshll.u32 %s203_s2, 4  ;;  %s129_s18 = int_to_ptr.vmem [resolvable:$true] %s128_s18 }
   0x5   :  { %vm61_vm0 = vcmp.ge.f32.partialorder %v19_v0, 0.0  ;;  %vm62_vm1 = vcmp.ge.f32.partialorder %v20_v1, 0.0  ;;  %s156_s21 = scalar_lea.vmem %s129_s18, 16  ;;  %p161_p1 = scmp.lt.s32.totalorder %s129_s18, %s129_s18 }
   0x6   :  { %v27_v6 = vmul.f32 1.442695, %v25_v4  ;;  %v29_v7 = vmul.f32 1.442695, %v26_v5  ;;  %v35_v30 = vsub.f32 %v31_v17, %v33_v18  ;;  %v36_v34 = vsub.f32 %v32_v21, %v34_v22  ;;  %p157_p0 = scmp.ne.s32.totalorder %s129_s18, %s156_s21  ;;  %p162_p2 = scmp.lt.s32.totalorder %s156_s21, %s156_s21 }
   0x8   :  { %144 = vpow2.f32 %v27_v6  ;;  %p163_p3 = por %p162_p2, %p161_p1 }
   0x9   :  { %146 = vpow2.f32 %v29_v7 }
   0xa   :  { %p164_p4 = pnand %p163_p3, %p157_p0 }
  0x12   :  { %v145_v8 = vpop.eup %144 }
  0x13   :  { %v147_v9 = vpop.eup %146  ;;  %v37_v10 = vadd.f32 1.0, %v145_v8  ;;  %v40_v12 = vmul.f32 -0.5, %v145_v8  ;;  %v43_v19 = vand.u32 2147483647, %v145_v8 }
  0x14   :  { %v46_v11 = vadd.f32 1.0, %v147_v9  ;;  %v49_v13 = vmul.f32 -0.5, %v147_v9  ;;  %v52_v23 = vand.u32 2147483647, %v147_v9 }
  0x15   :  { %148 = vrcp.f32 %v37_v10  ;;  %v41_v16 = vadd.f32 1.0, %v40_v12  ;;  %vm44_vm2 = vcmp.lt.f32.partialorder %v43_v19, 0.0004427343 }
  0x16   :  { %150 = vrcp.f32 %v46_v11  ;;  %v50_v20 = vadd.f32 1.0, %v49_v13  ;;  %vm53_vm3 = vcmp.lt.f32.partialorder %v52_v23, 0.0004427343 }
  0x17   :  { %152 = vlog2.f32 %v37_v10  ;;  %v42_v27 = vmul.f32 %v145_v8, %v41_v16 }
  0x18   :  { %154 = vlog2.f32 %v46_v11  ;;  %v51_v31 = vmul.f32 %v147_v9, %v50_v20 }
  0x1f   :  { %v149_v24 = vpop.eup %148 }
  0x20   :  { %v151_v25 = vpop.eup %150  ;;  %v63_v26 = vmul.f32 %v149_v24, %v145_v8 }
  0x21   :  { %v153_v28 = vpop.eup %152  ;;  %v64_v29 = vmul.f32 %v151_v25, %v147_v9 }
  0x22   :  { %v155_v32 = vpop.eup %154  ;;  %v65_v33 = vsel %vm61_vm0, %v149_v24, %v63_v26  ;;  %v39_v35 = vmul.f32 0.6931472, %v153_v28 }
  0x23   :  { %v66_v36 = vsel %vm62_vm1, %v151_v25, %v64_v29  ;;  %v78_v37 = vadd.f32 %v65_v33, %v21_v14  ;;  %v48_v38 = vmul.f32 0.6931472, %v155_v32  ;;  %v72_v45 = vmul.f32 %v65_v33, %v21_v14 }
  0x24   :  { %v79_v39 = vadd.f32 %v66_v36, %v22_v15  ;;  %v45_v40 = vsel %vm44_vm2, %v42_v27, %v39_v35  ;;  %v73_v46 = vmul.f32 %v66_v36, %v22_v15 }
  0x25   :  { %v54_v41 = vsel %vm53_vm3, %v51_v31, %v48_v38  ;;  %v55_v42 = vadd.f32 %v45_v40, %v35_v30 }
  0x26   :  { %v80_v43 = vadd.f32 %v79_v39, %v78_v37  ;;  %v56_v44 = vadd.f32 %v54_v41, %v36_v34  ;;  %v74_v48 = vadd.f32 %v73_v46, %v72_v45 }
  0x28   :  { %111 = vadd.xlane.f32.xlu1 %v80_v43  ;;  %v68_v47 = vadd.f32 %v56_v44, %v55_v42 }
  0x2a   :  { %87 = vadd.xlane.f32.xlu0 %v68_v47 }
  0x2e   :  { %99 = vadd.xlane.f32.xlu0 %v74_v48 }
  0xb5   :  { %v112_v49 = vpop.xlane.xlu1 %111 }
  0xb6   :  { %v113_v50 = vrot.slane %v112_v49, 4 }
  0xb7   :  { %v88_v51 = vpop.xlane.xlu0 %87 }
  0xb8   :  { %v114_v52 = vadd.f32 %v113_v50, %v112_v49  ;;  %v89_v53 = vrot.slane %v88_v51, 4 }
  0xba   :  { %v90_v54 = vadd.f32 %v89_v53, %v88_v51  ;;  %v115_v55 = vrot.slane %v114_v52, 2 }
  0xbb   :  { %v100_v56 = vpop.xlane.xlu0 %99 }
  0xbc   :  { %v91_v57 = vrot.slane %v90_v54, 2  ;;  %v101_v58 = vrot.slane %v100_v56, 4  ;;  %v116_v61 = vadd.f32 %v115_v55, %v114_v52 }
  0xbe   :  { %v102_v59 = vadd.f32 %v101_v58, %v100_v56  ;;  %v92_v60 = vadd.f32 %v91_v57, %v90_v54  ;;  %v117_v2 = vrot.slane %v116_v61, 1 }
  0xc0   :  { %v103_v62 = vrot.slane %v102_v59, 2  ;;  %v93_v63 = vrot.slane %v92_v60, 1  ;;  %v118_v5 = vadd.f32 %v117_v2, %v116_v61 }
  0xc2   :  { %v104_v0 = vadd.f32 %v103_v62, %v102_v59  ;;  %v94_v1 = vadd.f32 %v93_v63, %v92_v60 }
  0xc4   :  { %137 = vpush %v94_v1  ;;  %v105_v3 = vrot.slane %v104_v0, 1 }
  0xc6   :  { %v106_v4 = vadd.f32 %v105_v3, %v104_v0 }
  0xc8   :  { %139 = vpush %v106_v4 }
  0xc9   :  { %141 = vpush %v118_v5 }
  0xf5   :  { %s138_s1 = spop %137 }
  0xf6   :  { %97 = sst [smem:[#allocation5]] %s138_s1 }
  0xf9   :  { %s140_s19 = spop %139 }
  0xfa   :  { %109 = sst [smem:[#allocation5 + $0x1]] %s140_s19  ;;  %s142_s20 = spop %141 }
  0xfb   :  { %121 = sst [smem:[#allocation5 + $0x2]] %s142_s20 }
  0xfc   :  { %167 = shalt.err (!%p164_p4)
}
  0xfd   :  { %s170_s22 = smov [#allocation5]  }
  0xfe   :  { %131 = dma.smem_to_vmem %s170_s22, 16, %s129_s18, [#allocation6]  }
  0xff   :  { %168 = dma.done.wait [#allocation6], 16  }
 0x100   :  { %169 = vsyncadd [#allocation6], 4294967280 }
 0x101   :  { %135 = sfence }
 0x102   :  { %136 = vsyncpa [#allocation6], 1 }

</bundles_post_ra>
